<compile_context>
chip_gen: v7x
topology: tpu7x:2x2x1
jax: 0.10.0
libtpu: 0.0.40
codegen_flags: <defaults>
</compile_context>

<pallas_src>
import functools

import jax
import jax.numpy as jnp
from jax.experimental import pallas as pl
from jax.experimental.pallas import tpu as pltpu

_LANE = 128
_SUBLANE = 8


def _round_up(v, m):
    return (v + m - 1) // m * m


# ---------------------------------------------------------------------------
# Kernel: fused chain of Linear (+ tanh) layers on one activation tile.
# ---------------------------------------------------------------------------
def _mlp_chain_kernel(*refs, num_layers, act_after_last):
    """refs = (x, w0, b0, w1, b1, ..., w_{L-1}, b_{L-1}, out).

    Matmuls run with operands in their stored dtype (bf16 -> peak MXU on
    v6e/v7x) and accumulate in f32.  The epilogue (bias + tanh) stays in the
    f32 accumulator; tanh issues on the EUP slot and overlaps MXU work.  The
    running activation lives in VMEM between layers (no HBM round trips).
    """
    x_ref = refs[0]
    o_ref = refs[-1]
    wb = refs[1:-1]

    h = x_ref[...]
    for i in range(num_layers):
        w = wb[2 * i][...]
        b = wb[2 * i + 1][...].astype(jnp.float32)   # (1, out) broadcasts over rows
        acc = jnp.dot(h.astype(w.dtype), w, preferred_element_type=jnp.float32) + b
        if i < num_layers - 1 or act_after_last:
            acc = jnp.tanh(acc)
        h = acc
    o_ref[...] = h.astype(o_ref.dtype)


# ---------------------------------------------------------------------------
# One-time parameter preparation (hoisted out of the per-call path).
# ---------------------------------------------------------------------------
def prepare_mlp_params(params, compute_dtype=None):
    """Zero-pad weights/biases to 128-multiples (and optionally cast the
    matmul operands to e.g. bf16) ONCE; cache and reuse across forwards.

    `params` is a list of (W, b) with W shaped (in_features, out_features).
    Padding is semantics-preserving: padded weight rows/cols and bias lanes
    are exact zeros and tanh(0) = 0.
    """
    layers = []
    for w, b in params:
        wd = compute_dtype if compute_dtype is not None else w.dtype
        dip = _round_up(w.shape[0], _LANE)
        dop = _round_up(w.shape[1], _LANE)
        w_p = jnp.zeros((dip, dop), wd).at[: w.shape[0], : w.shape[1]].set(w.astype(wd))
        # Bias stays f32: the epilogue runs in the f32 accumulator (v5e-safe).
        b_p = jnp.zeros((1, dop), jnp.float32).at[0, : b.shape[0]].set(b.astype(jnp.float32))
        layers.append((w_p, b_p))
    return {
        "layers": layers,
        "in_features": int(params[0][0].shape[0]),
        "out_features": int(params[-1][0].shape[1]),
    }


# ---------------------------------------------------------------------------
# VMEM budgeting helpers.
# ---------------------------------------------------------------------------
def _vmem_capacity_bytes():
    try:
        info = pltpu.get_tpu_info()
        cap = getattr(info, "vmem_capacity_bytes", None)
        if cap:
            return int(cap)
    except Exception:
        pass
    return 64 * 1024 * 1024   # conservative: v7x per-TensorCore VMEM


def _chunk_vmem_bytes(tm, layers, act_itemsize, weight_buffers):
    """Estimated VMEM footprint of one fused chunk (~25% headroom)."""
    w_bytes = sum(
        w.size * w.dtype.itemsize * weight_buffers
        + b.size * b.dtype.itemsize * weight_buffers
        for w, b in layers
    )
    dims = [layers[0][0].shape[0]] + [w.shape[1] for w, _ in layers]
    io_bytes = 2 * tm * dims[0] * act_itemsize + 2 * tm * dims[-1] * act_itemsize
    scratch = 3 * tm * max(dims) * 4        # f32 running activation + temporaries
    return int(1.25 * (w_bytes + io_bytes + scratch))


# ---------------------------------------------------------------------------
# One fused pallas_call over a chunk of consecutive layers.
# ---------------------------------------------------------------------------
def _fused_chunk_call(x, layers, *, tm, act_after_last, out_width, out_dtype,
                      vmem_limit_bytes, single_buffer_weights):
    batch = x.shape[0]
    grid_m = pl.cdiv(batch, tm)
    wmode = {"pipeline_mode": pl.Buffered(1)} if single_buffer_weights else {}

    flat = [x]
    in_specs = [pl.BlockSpec((tm, x.shape[1]), lambda i: (i, 0))]
    for w_p, b_p in layers:
        dip, dop = w_p.shape
        flat += [w_p, b_p]
        # Constant index_map -> fetched once, VMEM resident across the grid;
        # single-buffer (no point double-buffering a block that never changes).
        in_specs.append(pl.BlockSpec((dip, dop), lambda i: (0, 0), **wmode))
        in_specs.append(pl.BlockSpec((1, dop), lambda i: (0, 0), **wmode))

    last_dop = layers[-1][0].shape[1]
    kernel = functools.partial(_mlp_chain_kernel, num_layers=len(layers),
                               act_after_last=act_after_last)
    return pl.pallas_call(
        kernel,
        out_shape=jax.ShapeDtypeStruct((batch, out_width), out_dtype),
        grid=(grid_m,),
        in_specs=in_specs,
        out_specs=pl.BlockSpec((tm, last_dop), lambda i: (i, 0)),
        compiler_params=pltpu.CompilerParams(
            dimension_semantics=("parallel",),
            vmem_limit_bytes=vmem_limit_bytes,
        ),
    )(*flat)


# ---------------------------------------------------------------------------
# Full MLP forward (same semantics as MLP.forward in the PyTorch module).
# ---------------------------------------------------------------------------
def mlp_forward_pallas(prepared, x, *, block_m=512, out_dtype=None):
    layers = prepared["layers"]
    out_f = prepared["out_features"]
    if out_dtype is None:
        out_dtype = x.dtype

    batch = x.shape[0]
    act_itemsize = jnp.dtype(layers[0][0].dtype).itemsize

    # Batch tile: multiple of 8 sublanes; >= 2 grid steps when batch allows
    # (keeps both v7x TensorCores fed), capped at block_m.
    tm = min(block_m, max(_SUBLANE, _round_up(-(-batch // 2), _SUBLANE)))
    tm = min(tm, _round_up(batch, _SUBLANE))

    # VMEM residency guard (v7x: 64 MiB vs 128 MiB on v5e/v6e).
    capacity = _vmem_capacity_bytes()
    budget = int(0.75 * capacity)
    while tm > _SUBLANE and max(
            _chunk_vmem_bytes(tm, [lyr], act_itemsize, 1) for lyr in layers) > budget:
        tm = max(_SUBLANE, _round_up(tm // 2, _SUBLANE))
    # TODO(synk): a single layer too large for VMEM even at tm=8 would need an
    # extra K/N grid axis (hidden-dim tiling); not needed for this module's sizes.

    # Greedily fuse consecutive layers into chunks that fit the budget
    # (one chunk == one pallas_call in the common case).
    chunks, cur = [], []
    for lyr in layers:
        if cur and _chunk_vmem_bytes(tm, cur + [lyr], act_itemsize, 1) > budget:
            chunks.append(cur)
            cur = [lyr]
        else:
            cur = cur + [lyr]
    chunks.append(cur)

    # Feature (K) dims must be exact zero-padded; the batch dim is left ragged
    # (Pallas masks the final block's stores -- no extra HBM pass over x).
    h = x
    dip0 = layers[0][0].shape[0]
    if h.shape[1] != dip0:
        h = jnp.pad(h, ((0, 0), (0, dip0 - h.shape[1])))

    n_chunks = len(chunks)
    for ci, chunk in enumerate(chunks):
        last_chunk = ci == n_chunks - 1
        # Intermediate chunk outputs keep the padded width and matmul dtype so
        # the next chunk's operands are already native and lane-dense; the
        # final output is exactly (batch, out_features).
        out_width = out_f if last_chunk else chunk[-1][0].shape[1]
        o_dtype = out_dtype if last_chunk else chunk[-1][0].dtype
        vmem_limit = int(min(
            capacity,
            max(_chunk_vmem_bytes(tm, chunk, act_itemsize, 2), 16 * 1024 * 1024),
        ))
        kwargs = dict(tm=tm, act_after_last=not last_chunk, out_width=out_width,
                      out_dtype=o_dtype, vmem_limit_bytes=vmem_limit)
        try:
            h = _fused_chunk_call(h, chunk, single_buffer_weights=True, **kwargs)
        except Exception:
            # Fallback if this jax build rejects pl.Buffered(1) single-buffering.
            h = _fused_chunk_call(h, chunk, single_buffer_weights=False, **kwargs)
    return h


# ---------------------------------------------------------------------------
# Parameter init matching PyTorch nn.Linear (uniform(-1/sqrt(fan_in), +)).
# ---------------------------------------------------------------------------
def init_linear_params(key, fan_in, fan_out, dtype=jnp.float32):
    kw, kb = jax.random.split(key)
    bound = 1.0 / jnp.sqrt(jnp.asarray(fan_in, dtype))
    w = jax.random.uniform(kw, (fan_in, fan_out), dtype, -bound, bound)
    b = jax.random.uniform(kb, (fan_out,), dtype, -bound, bound)
    return w, b


def init_mlp_params(key, in_features, out_features, num_layers, num_neurons):
    keys = jax.random.split(key, num_layers + 1)
    params = [init_linear_params(keys[0], in_features, num_neurons)]        # layer_input
    for ii in range(num_layers - 1):                                        # hidden layers
        params.append(init_linear_params(keys[1 + ii], num_neurons, num_neurons))
    params.append(init_linear_params(keys[num_layers], num_neurons, out_features))  # layer_output
    return params


if __name__ == "__main__":
    # Small shapes consistent with the module's forward.
    batch = 8
    in_features = 4
    out_features = 3
    num_layers = 3
    num_neurons = 32

    key = jax.random.PRNGKey(0)
    kx, kp = jax.random.split(key)
    x = jax.random.normal(kx, (batch, in_features), dtype=jnp.float32)
    params = init_mlp_params(kp, in_features, out_features, num_layers, num_neurons)

    # Pure-JAX reference with the exact PyTorch MLP.forward semantics.
    ref = x
    for i, (w, b) in enumerate(params):
        ref = ref @ w + b
        if i < len(params) - 1:
            ref = jnp.tanh(ref)

    # 1) f32 path: identical semantics to the module (tight tolerance).
    prep_f32 = prepare_mlp_params(params)
    out_f32 = jax.block_until_ready(mlp_forward_pallas(prep_f32, x))
    assert out_f32.shape == (batch, out_features)
    assert jnp.allclose(out_f32, ref, atol=1e-5, rtol=1e-5)

    # 2) bf16-operand path (peak-MXU path on v6e/v7x; f32 accumulation keeps
    #    the numeric difference bounded).
    prep_bf16 = prepare_mlp_params(params, compute_dtype=jnp.bfloat16)
    out_bf16 = jax.block_until_ready(
        mlp_forward_pallas(prep_bf16, x.astype(jnp.bfloat16), out_dtype=jnp.float32))
    assert out_bf16.shape == (batch, out_features)
    assert jnp.allclose(out_bf16, ref, atol=5e-2, rtol=5e-2)

    print("KERNEL_OK")
</pallas_src>

<mosaic_0001>
module attributes {stable_mosaic.version = 11 : i64} {
  func.func @_mlp_chain_kernel(%arg0: i32, %arg1: memref<8x128xf32, #tpu.memory_space<vmem>>, %arg2: memref<128x128xf32, #tpu.memory_space<vmem>>, %arg3: memref<1x128xf32, #tpu.memory_space<vmem>>, %arg4: memref<128x128xf32, #tpu.memory_space<vmem>>, %arg5: memref<1x128xf32, #tpu.memory_space<vmem>>, %arg6: memref<128x128xf32, #tpu.memory_space<vmem>>, %arg7: memref<1x128xf32, #tpu.memory_space<vmem>>, %arg8: memref<128x128xf32, #tpu.memory_space<vmem>>, %arg9: memref<1x128xf32, #tpu.memory_space<vmem>>, %arg10: memref<8x128xf32, #tpu.memory_space<vmem>>) attributes {dimension_semantics = [#tpu.dimension_semantics<parallel>], iteration_bounds = array<i64: 1>, scalar_prefetch = 0 : i64, scratch_operands = 0 : i64, tpu.core_type = #tpu.core_type<tc>, window_params = [{transform_indices = @transform_0, window_bounds = array<i64: 8, 128>}, {pipeline_mode = #tpu.pipeline_mode<synchronous>, transform_indices = @transform_1, window_bounds = array<i64: 128, 128>}, {pipeline_mode = #tpu.pipeline_mode<synchronous>, transform_indices = @transform_2, window_bounds = array<i64: 1, 128>}, {pipeline_mode = #tpu.pipeline_mode<synchronous>, transform_indices = @transform_3, window_bounds = array<i64: 128, 128>}, {pipeline_mode = #tpu.pipeline_mode<synchronous>, transform_indices = @transform_4, window_bounds = array<i64: 1, 128>}, {pipeline_mode = #tpu.pipeline_mode<synchronous>, transform_indices = @transform_5, window_bounds = array<i64: 128, 128>}, {pipeline_mode = #tpu.pipeline_mode<synchronous>, transform_indices = @transform_6, window_bounds = array<i64: 1, 128>}, {pipeline_mode = #tpu.pipeline_mode<synchronous>, transform_indices = @transform_7, window_bounds = array<i64: 128, 128>}, {pipeline_mode = #tpu.pipeline_mode<synchronous>, transform_indices = @transform_8, window_bounds = array<i64: 1, 128>}, {transform_indices = @transform_9, window_bounds = array<i64: 8, 128>}]} {
    %c0 = arith.constant 0 : index
    %c0_0 = arith.constant 0 : index
    %0 = vector.load %arg1[%c0, %c0_0] : memref<8x128xf32, #tpu.memory_space<vmem>>, vector<8x128xf32>
    %c0_1 = arith.constant 0 : index
    %c0_2 = arith.constant 0 : index
    %1 = vector.load %arg2[%c0_1, %c0_2] : memref<128x128xf32, #tpu.memory_space<vmem>>, vector<128x128xf32>
    %c0_3 = arith.constant 0 : index
    %c0_4 = arith.constant 0 : index
    %2 = vector.load %arg3[%c0_3, %c0_4] : memref<1x128xf32, #tpu.memory_space<vmem>>, vector<1x128xf32>
    %cst = arith.constant dense<0.000000e+00> : vector<8x128xf32>
    %3 = tpu.matmul %0, %1, %cst {dimension_numbers = #tpu.dot_dimension_numbers<[1], [0], [0], [1], [0, 0, 1, 1], [], []>} : vector<8x128xf32>, vector<128x128xf32>, vector<8x128xf32> -> vector<8x128xf32>
    %4 = vector.broadcast %2 : vector<1x128xf32> to vector<8x128xf32>
    %5 = arith.addf %3, %4 : vector<8x128xf32>
    %6 = math.tanh %5 : vector<8x128xf32>
    %c0_5 = arith.constant 0 : index
    %c0_6 = arith.constant 0 : index
    %7 = vector.load %arg4[%c0_5, %c0_6] : memref<128x128xf32, #tpu.memory_space<vmem>>, vector<128x128xf32>
    %c0_7 = arith.constant 0 : index
    %c0_8 = arith.constant 0 : index
    %8 = vector.load %arg5[%c0_7, %c0_8] : memref<1x128xf32, #tpu.memory_space<vmem>>, vector<1x128xf32>
    %cst_9 = arith.constant dense<0.000000e+00> : vector<8x128xf32>
    %9 = tpu.matmul %6, %7, %cst_9 {dimension_numbers = #tpu.dot_dimension_numbers<[1], [0], [0], [1], [0, 0, 1, 1], [], []>} : vector<8x128xf32>, vector<128x128xf32>, vector<8x128xf32> -> vector<8x128xf32>
    %10 = vector.broadcast %8 : vector<1x128xf32> to vector<8x128xf32>
    %11 = arith.addf %9, %10 : vector<8x128xf32>
    %12 = math.tanh %11 : vector<8x128xf32>
    %c0_10 = arith.constant 0 : index
    %c0_11 = arith.constant 0 : index
    %13 = vector.load %arg6[%c0_10, %c0_11] : memref<128x128xf32, #tpu.memory_space<vmem>>, vector<128x128xf32>
    %c0_12 = arith.constant 0 : index
    %c0_13 = arith.constant 0 : index
    %14 = vector.load %arg7[%c0_12, %c0_13] : memref<1x128xf32, #tpu.memory_space<vmem>>, vector<1x128xf32>
    %cst_14 = arith.constant dense<0.000000e+00> : vector<8x128xf32>
    %15 = tpu.matmul %12, %13, %cst_14 {dimension_numbers = #tpu.dot_dimension_numbers<[1], [0], [0], [1], [0, 0, 1, 1], [], []>} : vector<8x128xf32>, vector<128x128xf32>, vector<8x128xf32> -> vector<8x128xf32>
    %16 = vector.broadcast %14 : vector<1x128xf32> to vector<8x128xf32>
    %17 = arith.addf %15, %16 : vector<8x128xf32>
    %18 = math.tanh %17 : vector<8x128xf32>
    %c0_15 = arith.constant 0 : index
    %c0_16 = arith.constant 0 : index
    %19 = vector.load %arg8[%c0_15, %c0_16] : memref<128x128xf32, #tpu.memory_space<vmem>>, vector<128x128xf32>
    %c0_17 = arith.constant 0 : index
    %c0_18 = arith.constant 0 : index
    %20 = vector.load %arg9[%c0_17, %c0_18] : memref<1x128xf32, #tpu.memory_space<vmem>>, vector<1x128xf32>
    %cst_19 = arith.constant dense<0.000000e+00> : vector<8x128xf32>
    %21 = tpu.matmul %18, %19, %cst_19 {dimension_numbers = #tpu.dot_dimension_numbers<[1], [0], [0], [1], [0, 0, 1, 1], [], []>} : vector<8x128xf32>, vector<128x128xf32>, vector<8x128xf32> -> vector<8x128xf32>
    %22 = vector.broadcast %20 : vector<1x128xf32> to vector<8x128xf32>
    %23 = arith.addf %21, %22 : vector<8x128xf32>
    %c0_20 = arith.constant 0 : index
    %c0_21 = arith.constant 0 : index
    %24 = vector.load %arg10[%c0_20, %c0_21] : memref<8x128xf32, #tpu.memory_space<vmem>>, vector<8x128xf32>
    tpu.vector_store %arg10[%c0_20, %c0_21], %23 {strides = array<i32>} : memref<8x128xf32, #tpu.memory_space<vmem>>, vector<8x128xf32>,
    return
  }
  func.func @transform_0(%arg0: i32) -> (i32, i32) {
    %c0_i32 = arith.constant 0 : i32
    %c0_i32_0 = arith.constant 0 : i32
    return %arg0, %c0_i32 : i32, i32
  }
  func.func @transform_1(%arg0: i32) -> (i32, i32) {
    %c0_i32 = arith.constant 0 : i32
    %c0_i32_0 = arith.constant 0 : i32
    %c0_i32_1 = arith.constant 0 : i32
    return %c0_i32, %c0_i32_0 : i32, i32
  }
  func.func @transform_2(%arg0: i32) -> (i32, i32) {
    %c0_i32 = arith.constant 0 : i32
    %c0_i32_0 = arith.constant 0 : i32
    %c0_i32_1 = arith.constant 0 : i32
    return %c0_i32, %c0_i32_0 : i32, i32
  }
  func.func @transform_3(%arg0: i32) -> (i32, i32) {
    %c0_i32 = arith.constant 0 : i32
    %c0_i32_0 = arith.constant 0 : i32
    %c0_i32_1 = arith.constant 0 : i32
    return %c0_i32, %c0_i32_0 : i32, i32
  }
  func.func @transform_4(%arg0: i32) -> (i32, i32) {
    %c0_i32 = arith.constant 0 : i32
    %c0_i32_0 = arith.constant 0 : i32
    %c0_i32_1 = arith.constant 0 : i32
    return %c0_i32, %c0_i32_0 : i32, i32
  }
  func.func @transform_5(%arg0: i32) -> (i32, i32) {
    %c0_i32 = arith.constant 0 : i32
    %c0_i32_0 = arith.constant 0 : i32
    %c0_i32_1 = arith.constant 0 : i32
    return %c0_i32, %c0_i32_0 : i32, i32
  }
  func.func @transform_6(%arg0: i32) -> (i32, i32) {
    %c0_i32 = arith.constant 0 : i32
    %c0_i32_0 = arith.constant 0 : i32
    %c0_i32_1 = arith.constant 0 : i32
    return %c0_i32, %c0_i32_0 : i32, i32
  }
  func.func @transform_7(%arg0: i32) -> (i32, i32) {
    %c0_i32 = arith.constant 0 : i32
    %c0_i32_0 = arith.constant 0 : i32
    %c0_i32_1 = arith.constant 0 : i32
    return %c0_i32, %c0_i32_0 : i32, i32
  }
  func.func @transform_8(%arg0: i32) -> (i32, i32) {
    %c0_i32 = arith.constant 0 : i32
    %c0_i32_0 = arith.constant 0 : i32
    %c0_i32_1 = arith.constant 0 : i32
    return %c0_i32, %c0_i32_0 : i32, i32
  }
  func.func @transform_9(%arg0: i32) -> (i32, i32) {
    %c0_i32 = arith.constant 0 : i32
    %c0_i32_0 = arith.constant 0 : i32
    return %arg0, %c0_i32 : i32, i32
  }
}

module attributes {stable_mosaic.version = 11 : i64} {
  func.func @_mlp_chain_kernel(%arg0: i32, %arg1: memref<8x128xf32, #tpu.memory_space<vmem>>, %arg2: memref<128x128xf32, #tpu.memory_space<vmem>>, %arg3: memref<1x128xf32, #tpu.memory_space<vmem>>, %arg4: memref<128x128xf32, #tpu.memory_space<vmem>>, %arg5: memref<1x128xf32, #tpu.memory_space<vmem>>, %arg6: memref<128x128xf32, #tpu.memory_space<vmem>>, %arg7: memref<1x128xf32, #tpu.memory_space<vmem>>, %arg8: memref<128x128xf32, #tpu.memory_space<vmem>>, %arg9: memref<1x128xf32, #tpu.memory_space<vmem>>, %arg10: memref<8x128xf32, #tpu.memory_space<vmem>>) attributes {dimension_semantics = [#tpu.dimension_semantics<parallel>], iteration_bounds = array<i64: 1>, scalar_prefetch = 0 : i64, scratch_operands = 0 : i64, tpu.core_type = #tpu.core_type<tc>, window_params = [{transform_indices = @transform_0, window_bounds = array<i64: 8, 128>}, {pipeline_mode = #tpu.pipeline_mode<synchronous>, transform_indices = @transform_1, window_bounds = array<i64: 128, 128>}, {pipeline_mode = #tpu.pipeline_mode<synchronous>, transform_indices = @transform_2, window_bounds = array<i64: 1, 128>}, {pipeline_mode = #tpu.pipeline_mode<synchronous>, transform_indices = @transform_3, window_bounds = array<i64: 128, 128>}, {pipeline_mode = #tpu.pipeline_mode<synchronous>, transform_indices = @transform_4, window_bounds = array<i64: 1, 128>}, {pipeline_mode = #tpu.pipeline_mode<synchronous>, transform_indices = @transform_5, window_bounds = array<i64: 128, 128>}, {pipeline_mode = #tpu.pipeline_mode<synchronous>, transform_indices = @transform_6, window_bounds = array<i64: 1, 128>}, {pipeline_mode = #tpu.pipeline_mode<synchronous>, transform_indices = @transform_7, window_bounds = array<i64: 128, 128>}, {pipeline_mode = #tpu.pipeline_mode<synchronous>, transform_indices = @transform_8, window_bounds = array<i64: 1, 128>}, {transform_indices = @transform_9, window_bounds = array<i64: 8, 128>}]} {
    %c0 = arith.constant 0 : index
    %c0_0 = arith.constant 0 : index
    %0 = vector.load %arg1[%c0, %c0_0] : memref<8x128xf32, #tpu.memory_space<vmem>>, vector<8x128xf32>
    %c0_1 = arith.constant 0 : index
    %c0_2 = arith.constant 0 : index
    %1 = vector.load %arg2[%c0_1, %c0_2] : memref<128x128xf32, #tpu.memory_space<vmem>>, vector<128x128xf32>
    %c0_3 = arith.constant 0 : index
    %c0_4 = arith.constant 0 : index
    %2 = vector.load %arg3[%c0_3, %c0_4] : memref<1x128xf32, #tpu.memory_space<vmem>>, vector<1x128xf32>
    %cst = arith.constant dense<0.000000e+00> : vector<8x128xf32>
    %3 = tpu.matmul %0, %1, %cst {dimension_numbers = #tpu.dot_dimension_numbers<[1], [0], [0], [1], [0, 0, 1, 1], [], []>} : vector<8x128xf32>, vector<128x128xf32>, vector<8x128xf32> -> vector<8x128xf32>
    %4 = vector.broadcast %2 : vector<1x128xf32> to vector<8x128xf32>
    %5 = arith.addf %3, %4 : vector<8x128xf32>
    %6 = math.tanh %5 : vector<8x128xf32>
    %c0_5 = arith.constant 0 : index
    %c0_6 = arith.constant 0 : index
    %7 = vector.load %arg4[%c0_5, %c0_6] : memref<128x128xf32, #tpu.memory_space<vmem>>, vector<128x128xf32>
    %c0_7 = arith.constant 0 : index
    %c0_8 = arith.constant 0 : index
    %8 = vector.load %arg5[%c0_7, %c0_8] : memref<1x128xf32, #tpu.memory_space<vmem>>, vector<1x128xf32>
    %cst_9 = arith.constant dense<0.000000e+00> : vector<8x128xf32>
    %9 = tpu.matmul %6, %7, %cst_9 {dimension_numbers = #tpu.dot_dimension_numbers<[1], [0], [0], [1], [0, 0, 1, 1], [], []>} : vector<8x128xf32>, vector<128x128xf32>, vector<8x128xf32> -> vector<8x128xf32>
    %10 = vector.broadcast %8 : vector<1x128xf32> to vector<8x128xf32>
    %11 = arith.addf %9, %10 : vector<8x128xf32>
    %12 = math.tanh %11 : vector<8x128xf32>
    %c0_10 = arith.constant 0 : index
    %c0_11 = arith.constant 0 : index
    %13 = vector.load %arg6[%c0_10, %c0_11] : memref<128x128xf32, #tpu.memory_space<vmem>>, vector<128x128xf32>
    %c0_12 = arith.constant 0 : index
    %c0_13 = arith.constant 0 : index
    %14 = vector.load %arg7[%c0_12, %c0_13] : memref<1x128xf32, #tpu.memory_space<vmem>>, vector<1x128xf32>
    %cst_14 = arith.constant dense<0.000000e+00> : vector<8x128xf32>
    %15 = tpu.matmul %12, %13, %cst_14 {dimension_numbers = #tpu.dot_dimension_numbers<[1], [0], [0], [1], [0, 0, 1, 1], [], []>} : vector<8x128xf32>, vector<128x128xf32>, vector<8x128xf32> -> vector<8x128xf32>
    %16 = vector.broadcast %14 : vector<1x128xf32> to vector<8x128xf32>
    %17 = arith.addf %15, %16 : vector<8x128xf32>
    %18 = math.tanh %17 : vector<8x128xf32>
    %c0_15 = arith.constant 0 : index
    %c0_16 = arith.constant 0 : index
    %19 = vector.load %arg8[%c0_15, %c0_16] : memref<128x128xf32, #tpu.memory_space<vmem>>, vector<128x128xf32>
    %c0_17 = arith.constant 0 : index
    %c0_18 = arith.constant 0 : index
    %20 = vector.load %arg9[%c0_17, %c0_18] : memref<1x128xf32, #tpu.memory_space<vmem>>, vector<1x128xf32>
    %cst_19 = arith.constant dense<0.000000e+00> : vector<8x128xf32>
    %21 = tpu.matmul %18, %19, %cst_19 {dimension_numbers = #tpu.dot_dimension_numbers<[1], [0], [0], [1], [0, 0, 1, 1], [], []>} : vector<8x128xf32>, vector<128x128xf32>, vector<8x128xf32> -> vector<8x128xf32>
    %22 = vector.broadcast %20 : vector<1x128xf32> to vector<8x128xf32>
    %23 = arith.addf %21, %22 : vector<8x128xf32>
    %c0_20 = arith.constant 0 : index
    %c0_21 = arith.constant 0 : index
    %24 = vector.load %arg10[%c0_20, %c0_21] : memref<8x128xf32, #tpu.memory_space<vmem>>, vector<8x128xf32>
    tpu.vector_store %arg10[%c0_20, %c0_21], %23 {strides = array<i32>} : memref<8x128xf32, #tpu.memory_space<vmem>>, vector<8x128xf32>,
    return
  }
  func.func @transform_0(%arg0: i32) -> (i32, i32) {
    %c0_i32 = arith.constant 0 : i32
    %c0_i32_0 = arith.constant 0 : i32
    return %arg0, %c0_i32 : i32, i32
  }
  func.func @transform_1(%arg0: i32) -> (i32, i32) {
    %c0_i32 = arith.constant 0 : i32
    %c0_i32_0 = arith.constant 0 : i32
    %c0_i32_1 = arith.constant 0 : i32
    return %c0_i32, %c0_i32_0 : i32, i32
  }
  func.func @transform_2(%arg0: i32) -> (i32, i32) {
    %c0_i32 = arith.constant 0 : i32
    %c0_i32_0 = arith.constant 0 : i32
    %c0_i32_1 = arith.constant 0 : i32
    return %c0_i32, %c0_i32_0 : i32, i32
  }
  func.func @transform_3(%arg0: i32) -> (i32, i32) {
    %c0_i32 = arith.constant 0 : i32
    %c0_i32_0 = arith.constant 0 : i32
    %c0_i32_1 = arith.constant 0 : i32
    return %c0_i32, %c0_i32_0 : i32, i32
  }
  func.func @transform_4(%arg0: i32) -> (i32, i32) {
    %c0_i32 = arith.constant 0 : i32
    %c0_i32_0 = arith.constant 0 : i32
    %c0_i32_1 = arith.constant 0 : i32
    return %c0_i32, %c0_i32_0 : i32, i32
  }
  func.func @transform_5(%arg0: i32) -> (i32, i32) {
    %c0_i32 = arith.constant 0 : i32
    %c0_i32_0 = arith.constant 0 : i32
    %c0_i32_1 = arith.constant 0 : i32
    return %c0_i32, %c0_i32_0 : i32, i32
  }
  func.func @transform_6(%arg0: i32) -> (i32, i32) {
    %c0_i32 = arith.constant 0 : i32
    %c0_i32_0 = arith.constant 0 : i32
    %c0_i32_1 = arith.constant 0 : i32
    return %c0_i32, %c0_i32_0 : i32, i32
  }
  func.func @transform_7(%arg0: i32) -> (i32, i32) {
    %c0_i32 = arith.constant 0 : i32
    %c0_i32_0 = arith.constant 0 : i32
    %c0_i32_1 = arith.constant 0 : i32
    return %c0_i32, %c0_i32_0 : i32, i32
  }
  func.func @transform_8(%arg0: i32) -> (i32, i32) {
    %c0_i32 = arith.constant 0 : i32
    %c0_i32_0 = arith.constant 0 : i32
    %c0_i32_1 = arith.constant 0 : i32
    return %c0_i32, %c0_i32_0 : i32, i32
  }
  func.func @transform_9(%arg0: i32) -> (i32, i32) {
    %c0_i32 = arith.constant 0 : i32
    %c0_i32_0 = arith.constant 0 : i32
    return %arg0, %c0_i32 : i32, i32
  }
}

</mosaic_0001>

<bundles_post_ra>
// kernel: tpu_custom_call.1
= control target key start
LH: loop header
LB: loop body
LE: loop exit
PB: predicated region body
PF: predicated region fallthrough
CT: control target
= control target key end

     0   :  { %14 = vsyncpa [#allocation3], 0  ;;  %s1109_s0 = inlined_call_operand.hbm [shape: f32[8,128], index: 0, kind: input, shape index: {}]   ;;  %s1110_s1 = inlined_call_operand.hbm [shape: f32[128,128], index: 1, kind: input, shape index: {}]   ;;  %s1111_s2 = inlined_call_operand.vmem [shape: f32[1,128], index: 2, kind: input, shape index: {}]   ;;  %s1112_s3 = inlined_call_operand.hbm [shape: f32[128,128], index: 3, kind: input, shape index: {}]   ;;  %s1113_s4 = inlined_call_operand.vmem [shape: f32[1,128], index: 4, kind: input, shape index: {}]   ;;  %s1114_s5 = inlined_call_operand.hbm [shape: f32[128,128], index: 5, kind: input, shape index: {}]   ;;  %s1115_s6 = inlined_call_operand.vmem [shape: f32[1,128], index: 6, kind: input, shape index: {}]   ;;  %s1116_s7 = inlined_call_operand.hbm [shape: f32[128,128], index: 7, kind: input, shape index: {}]   ;;  %s1117_s8 = inlined_call_operand.vmem [shape: f32[1,128], index: 8, kind: input, shape index: {}]   ;;  %s1118_s9 = inlined_call_operand.vmem [shape: f32[8,3], index: 9, kind: output, shape index: {}]  }
   0x1   :  { %15 = vsyncpa [#allocation5], 0 }
   0x2   :  { %16 = vsyncpa [#allocation8], 0  ;;  %s922_s30 = smov [#allocation4]   ;;  %s806_s13 = scalar_lea.hbm %s1110_s1, 2048 }
   0x3   :  { %s32_s10 = sshll.u32 %s922_s30, 4  ;;  %p807_p0 = scmp.ne.s32.totalorder %s1110_s1, %s806_s13  ;;  %s33_s10 = int_to_ptr.vmem [resolvable:$true] %s32_s10 }
   0x4   :  { %p810_p1 = scmp.lt.u32.totalorder %s806_s13, %s1110_s1 }
   0x6   :  { %p812_p2 = pnand %p810_p1, %p807_p0 }
   0x8   :  { %815 = shalt.err (!%p812_p2)
}
   0x9   :  { %s816_s18 = scalar_lea.vmem %s33_s10, 2048  ;;  %p821_p4 = scmp.lt.s32.totalorder %s33_s10, %s33_s10 }
   0xa   :  { %p817_p3 = scmp.ne.s32.totalorder %s33_s10, %s816_s18  ;;  %p822_p5 = scmp.lt.s32.totalorder %s816_s18, %s816_s18 }
   0xc   :  { %p823_p6 = por %p822_p5, %p821_p4 }
   0xe   :  { %p824_p7 = pnand %p823_p6, %p817_p3 }
  0x10   :  { %827 = shalt.err (!%p824_p7)
}
  0x11   :  { %s923_s19 = smov 128   ;;  %s924_s20 = smov 8  }
  0x12   :  { %38 = dma.hbm_to_vmem [thread:$0]  %s1110_s1, 2048, %s33_s10, [#allocation5], %s923_s19, %s923_s19, %s924_s20  }
  0x13   :  { %s925_s23 = smov [#allocation7]   ;;  %s926_s25 = smov [#allocation2]  }
  0x14   :  { %s60_s24 = sshll.u32 %s925_s23, 4  ;;  %s23_s26 = sshll.u32 %s926_s25, 4  ;;  %s61_s24 = int_to_ptr.vmem [resolvable:$true] %s60_s24  ;;  %s24_s26 = int_to_ptr.vmem [resolvable:$true] %s23_s26 }
  0x15   :  { %s828_s29 = scalar_lea.hbm %s1114_s5, 2048 }
  0x16   :  { %p829_p8 = scmp.ne.s32.totalorder %s1114_s5, %s828_s29  ;;  %p832_p9 = scmp.lt.u32.totalorder %s828_s29, %s1114_s5 }
  0x18   :  { %p834_p10 = pnand %p832_p9, %p829_p8 }
  0x1a   :  { %837 = shalt.err (!%p834_p10)
}
  0x1b   :  { %s838_s1 = scalar_lea.vmem %s61_s24, 2048  ;;  %p843_p12 = scmp.lt.s32.totalorder %s61_s24, %s61_s24 }
  0x1c   :  { %p839_p11 = scmp.ne.s32.totalorder %s61_s24, %s838_s1  ;;  %p844_p13 = scmp.lt.s32.totalorder %s838_s1, %s838_s1 }
  0x1e   :  { %p845_p0 = por %p844_p13, %p843_p12 }
  0x20   :  { %p846_p1 = pnand %p845_p0, %p839_p11 }
  0x22   :  { %849 = shalt.err (!%p846_p1)
}
  0x23   :  { %66 = dma.hbm_to_vmem [thread:$0]  %s1114_s5, 2048, %s61_s24, [#allocation8], %s923_s19, %s923_s19, %s924_s20  }
  0x24   :  { %s850_s17 = scalar_lea.hbm %s1109_s0, 128 }
  0x25   :  { %p851_p2 = scmp.ne.s32.totalorder %s1109_s0, %s850_s17  ;;  %p854_p3 = scmp.lt.u32.totalorder %s850_s17, %s1109_s0 }
  0x27   :  { %p856_p4 = pnand %p854_p3, %p851_p2 }
  0x29   :  { %859 = shalt.err (!%p856_p4)
}
  0x2a   :  { %s860_s25 = scalar_lea.vmem %s24_s26, 128  ;;  %p865_p6 = scmp.lt.s32.totalorder %s24_s26, %s24_s26 }
  0x2b   :  { %p861_p5 = scmp.ne.s32.totalorder %s24_s26, %s860_s25  ;;  %p866_p7 = scmp.lt.s32.totalorder %s860_s25, %s860_s25 }
  0x2d   :  { %p867_p8 = por %p866_p7, %p865_p6 }
  0x2f   :  { %p868_p9 = pnand %p867_p8, %p861_p5 }
  0x31   :  { %871 = shalt.err (!%p868_p9)
}
  0x32   :  { %26 = dma.hbm_to_vmem [thread:$0]  %s1109_s0, 128, %s24_s26, [#allocation3]  }
  0x33   :  { %s927_s27 = smov [#allocation6]   ;;  %s928_s29 = smov [#allocation9]  }
  0x34   :  { %s46_s28 = sshll.u32 %s927_s27, 4  ;;  %s74_s30 = sshll.u32 %s928_s29, 4  ;;  %s47_s28 = int_to_ptr.vmem [resolvable:$true] %s46_s28  ;;  %s75_s30 = int_to_ptr.vmem [resolvable:$true] %s74_s30 }
  0x35   :  { %s872_s13 = scalar_lea.hbm %s1112_s3, 2048 }
  0x36   :  { %p873_p10 = scmp.ne.s32.totalorder %s1112_s3, %s872_s13  ;;  %p876_p11 = scmp.lt.u32.totalorder %s872_s13, %s1112_s3 }
  0x38   :  { %p878_p12 = pnand %p876_p11, %p873_p10 }
  0x3a   :  { %881 = shalt.err (!%p878_p12)
}
  0x3b   :  { %s882_s0 = scalar_lea.vmem %s47_s28, 2048  ;;  %p887_p0 = scmp.lt.s32.totalorder %s47_s28, %s47_s28 }
  0x3c   :  { %p883_p13 = scmp.ne.s32.totalorder %s47_s28, %s882_s0  ;;  %p888_p1 = scmp.lt.s32.totalorder %s882_s0, %s882_s0 }
  0x3e   :  { %p889_p2 = por %p888_p1, %p887_p0 }
  0x40   :  { %p890_p3 = pnand %p889_p2, %p883_p13 }
  0x42   :  { %893 = shalt.err (!%p890_p3)
}
  0x43   :  { %52 = dma.hbm_to_vmem [thread:$0]  %s1112_s3, 2048, %s47_s28, [#allocation5], %s923_s19, %s923_s19, %s924_s20  }
  0x44   :  { %s894_s21 = scalar_lea.hbm %s1116_s7, 2048 }
  0x45   :  { %p895_p4 = scmp.ne.s32.totalorder %s1116_s7, %s894_s21  ;;  %p898_p5 = scmp.lt.u32.totalorder %s894_s21, %s1116_s7 }
  0x47   :  { %p900_p6 = pnand %p898_p5, %p895_p4 }
  0x49   :  { %903 = shalt.err (!%p900_p6)
}
  0x4a   :  { %s904_s24 = scalar_lea.vmem %s75_s30, 2048  ;;  %p909_p8 = scmp.lt.s32.totalorder %s75_s30, %s75_s30 }
  0x4b   :  { %p905_p7 = scmp.ne.s32.totalorder %s75_s30, %s904_s24  ;;  %p910_p9 = scmp.lt.s32.totalorder %s904_s24, %s904_s24 }
  0x4d   :  { %p911_p10 = por %p910_p9, %p909_p8 }
  0x4f   :  { %p912_p11 = pnand %p911_p10, %p905_p7 }
  0x51   :  { %915 = shalt.err (!%p912_p11)
}
  0x52   :  { %80 = dma.hbm_to_vmem [thread:$0]  %s1116_s7, 2048, %s75_s30, [#allocation8], %s923_s19, %s923_s19, %s924_s20  }
  0x53   :  { %916 = dma.done.wait [#allocation3], 128  }
  0x54   :  { %917 = vsyncadd [#allocation3], 4294967168 }
  0x55   :  { %918 = dma.done.wait [#allocation5], 4096  }
  0x56   :  { %919 = vsyncadd [#allocation5], 4294963200 }
  0x57   :  { %920 = dma.done.wait [#allocation8], 4096  }
  0x58   :  { %921 = vsyncadd [#allocation8], 4294963200  ;;  %v929_v0 = vmov 0.0|0.0   ;;  %vm930_vm0 = vmmov 0   ;;  %v931_v1 = vmov 0.0   ;;  %v99_v2 = vld [vmem:[#allocation4] sm:$0xff] }
  0x59   :  { %694 = vmatprep.subr.bf16.mxu0 %v929_v0  ;;  %586 = vmatprep.mubr.msk.f32.mxu0 %vm930_vm0, %v931_v1  ;;  %v100_v3 = vld [vmem:[#allocation4 + $0x8] sm:$0xff]  ;;  %v101_v4 = vld [vmem:[#allocation4 + $0x10] sm:$0xff]  ;;  %v102_v6 = vld [vmem:[#allocation4 + $0x18] sm:$0xff] }
  0x5a   :  { %718 = vmatprep.subr.bf16.mxu1 %v929_v0  ;;  %621 = vmatprep.mubr.msk.f32.mxu1 %vm930_vm0, %v931_v1  ;;  %v695_v5 = vpack.c.bf16 %v100_v3, %v99_v2  ;;  %v698_v7 = vpack.c.bf16 %v102_v6, %v101_v4  ;;  %v103_v8 = vld [vmem:[#allocation4 + $0x20] sm:$0xff]  ;;  %v104_v9 = vld [vmem:[#allocation4 + $0x28] sm:$0xff]  ;;  %v195_v12 = vld [vmem:[#allocation6 + $0x10] sm:$0xff] }
  0x5b   :  { %v193_v10 = vld [vmem:[#allocation6] sm:$0xff]  ;;  %v194_v11 = vld [vmem:[#allocation6 + $0x8] sm:$0xff]  ;;  %v196_v13 = vld [vmem:[#allocation6 + $0x18] sm:$0xff]  ;;  %v701_v14 = vpack.c.bf16 %v104_v9, %v103_v8 }
  0x5c   :  { %696 = vmatpush3.bf16.msra.mxu0 %v695_v5  ;;  %v719_v15 = vpack.c.bf16 %v194_v11, %v193_v10  ;;  %v105_v16 = vld [vmem:[#allocation4 + $0x30] sm:$0xff]  ;;  %v106_v17 = vld [vmem:[#allocation4 + $0x38] sm:$0xff]  ;;  %v722_v18 = vpack.c.bf16 %v196_v13, %v195_v12  ;;  %v197_v19 = vld [vmem:[#allocation6 + $0x20] sm:$0xff] }
  0x5d   :  { %697 = vmatprep.subr.bf16.mxu0 %v929_v0  ;;  %v198_v20 = vld [vmem:[#allocation6 + $0x28] sm:$0xff]  ;;  %v704_v21 = vpack.c.bf16 %v106_v17, %v105_v16  ;;  %v107_v22 = vld [vmem:[#allocation4 + $0x40] sm:$0xff]  ;;  %v199_v25 = vld [vmem:[#allocation6 + $0x30] sm:$0xff] }
  0x5e   :  { %720 = vmatpush3.bf16.msra.mxu1 %v719_v15  ;;  %v108_v23 = vld [vmem:[#allocation4 + $0x48] sm:$0xff]  ;;  %v725_v24 = vpack.c.bf16 %v198_v20, %v197_v19  ;;  %v200_v26 = vld [vmem:[#allocation6 + $0x38] sm:$0xff]  ;;  %v109_v28 = vld [vmem:[#allocation4 + $0x50] sm:$0xff] }
  0x5f   :  { %721 = vmatprep.subr.bf16.mxu1 %v929_v0  ;;  %v707_v27 = vpack.c.bf16 %v108_v23, %v107_v22  ;;  %v110_v29 = vld [vmem:[#allocation4 + $0x58] sm:$0xff]  ;;  %v728_v30 = vpack.c.bf16 %v200_v26, %v199_v25  ;;  %v201_v31 = vld [vmem:[#allocation6 + $0x40] sm:$0xff]  ;;  %v202_v32 = vld [vmem:[#allocation6 + $0x48] sm:$0xff] }
  0x60   :  { %699 = vmatpush3.bf16.msra.mxu0 %v698_v7  ;;  %v710_v33 = vpack.c.bf16 %v110_v29, %v109_v28  ;;  %v111_v34 = vld [vmem:[#allocation4 + $0x60] sm:$0xff]  ;;  %v112_v35 = vld [vmem:[#allocation4 + $0x68] sm:$0xff]  ;;  %v731_v36 = vpack.c.bf16 %v202_v32, %v201_v31  ;;  %v113_v38 = vld [vmem:[#allocation4 + $0x70] sm:$0xff] }
  0x61   :  { %700 = vmatprep.subr.bf16.mxu0 %v929_v0  ;;  %v713_v37 = vpack.c.bf16 %v112_v35, %v111_v34  ;;  %v114_v39 = vld [vmem:[#allocation4 + $0x78] sm:$0xff]  ;;  %v203_v42 = vld [vmem:[#allocation6 + $0x50] sm:$0xff]  ;;  %v205_v45 = vld [vmem:[#allocation6 + $0x60] sm:$0xff] }
  0x62   :  { %723 = vmatpush3.bf16.msra.mxu1 %v722_v18  ;;  %v716_v40 = vpack.c.bf16 %v114_v39, %v113_v38  ;;  %v98_v41 = vld [vmem:[#allocation2] sm:$0xff]  ;;  %v206_v46 = vld [vmem:[#allocation6 + $0x68] sm:$0xff]  ;;  %v207_v48 = vld [vmem:[#allocation6 + $0x70] sm:$0xff] }
  0x63   :  { %724 = vmatprep.subr.bf16.mxu1 %v929_v0  ;;  %v204_v43 = vld [vmem:[#allocation6 + $0x58] sm:$0xff]  ;;  %v737_v47 = vpack.c.bf16 %v206_v46, %v205_v45  ;;  %v287_v51 = vld [vmem:[#allocation7] sm:$0xff]  ;;  %v288_v52 = vld [vmem:[#allocation7 + $0x8] sm:$0xff] }
  0x64   :  { %702 = vmatpush3.bf16.msra.mxu0 %v701_v14  ;;  %v734_v44 = vpack.c.bf16 %v204_v43, %v203_v42  ;;  %v208_v49 = vld [vmem:[#allocation6 + $0x78] sm:$0xff]  ;;  %v289_v53 = vld [vmem:[#allocation7 + $0x10] sm:$0xff]  ;;  %v743_v54 = vpack.c.bf16 %v288_v52, %v287_v51  ;;  %v291_v57 = vld [vmem:[#allocation7 + $0x20] sm:$0xff] }
  0x65   :  { %703 = vmatprep.subr.bf16.mxu0 %v929_v0  ;;  %v740_v50 = vpack.c.bf16 %v208_v49, %v207_v48  ;;  %v290_v55 = vld [vmem:[#allocation7 + $0x18] sm:$0xff]  ;;  %v292_v58 = vld [vmem:[#allocation7 + $0x28] sm:$0xff]  ;;  %v293_v60 = vld [vmem:[#allocation7 + $0x30] sm:$0xff] }
  0x66   :  { %726 = vmatpush3.bf16.msra.mxu1 %v725_v24  ;;  %v746_v56 = vpack.c.bf16 %v290_v55, %v289_v53  ;;  %v749_v59 = vpack.c.bf16 %v292_v58, %v291_v57  ;;  %v294_v61 = vld [vmem:[#allocation7 + $0x38] sm:$0xff]  ;;  %v295_v63 = vld [vmem:[#allocation7 + $0x40] sm:$0xff]  ;;  %v296_v2 = vld [vmem:[#allocation7 + $0x48] sm:$0xff] }
  0x67   :  { %727 = vmatprep.subr.bf16.mxu1 %v929_v0  ;;  %v752_v62 = vpack.c.bf16 %v294_v61, %v293_v60  ;;  %v755_v3 = vpack.c.bf16 %v296_v2, %v295_v63  ;;  %v482_v4 = vld [vmem:[%s1111_s2] ss:$0 sm:$0xff]  ;;  %v298_v10 = vld [vmem:[#allocation7 + $0x58] sm:$0xff]  ;;  %v299_v12 = vld [vmem:[#allocation7 + $0x60] sm:$0xff] }
  0x68   :  { %705 = vmatpush3.bf16.msra.mxu0 %v704_v21  ;;  %v297_v9 = vld [vmem:[#allocation7 + $0x50] sm:$0xff]  ;;  %v300_v13 = vld [vmem:[#allocation7 + $0x68] sm:$0xff]  ;;  %v302_v16 = vld [vmem:[#allocation7 + $0x78] sm:$0xff] }
  0x69   :  { %706 = vmatprep.subr.bf16.mxu0 %v929_v0  ;;  %v758_v11 = vpack.c.bf16 %v298_v10, %v297_v9  ;;  %v761_v14 = vpack.c.bf16 %v300_v13, %v299_v12  ;;  %v301_v15 = vld [vmem:[#allocation7 + $0x70] sm:$0xff]  ;;  %v381_v18 = vld [vmem:[#allocation9] sm:$0xff]  ;;  %v382_v19 = vld [vmem:[#allocation9 + $0x8] sm:$0xff] }
  0x6a   :  { %729 = vmatpush3.bf16.msra.mxu1 %v728_v30  ;;  %v764_v17 = vpack.c.bf16 %v302_v16, %v301_v15  ;;  %v383_v20 = vld [vmem:[#allocation9 + $0x10] sm:$0xff]  ;;  %v384_v21 = vld [vmem:[#allocation9 + $0x18] sm:$0xff]  ;;  %v385_v23 = vld [vmem:[#allocation9 + $0x20] sm:$0xff] }
  0x6b   :  { %730 = vmatprep.subr.bf16.mxu1 %v929_v0  ;;  %v770_v22 = vpack.c.bf16 %v384_v21, %v383_v20  ;;  %v386_v24 = vld [vmem:[#allocation9 + $0x28] sm:$0xff]  ;;  %v387_v26 = vld [vmem:[#allocation9 + $0x30] sm:$0xff]  ;;  %v389_v29 = vld [vmem:[#allocation9 + $0x40] sm:$0xff] }
  0x6c   :  { %708 = vmatpush3.bf16.msra.mxu0 %v707_v27  ;;  %v773_v25 = vpack.c.bf16 %v386_v24, %v385_v23  ;;  %v388_v27 = vld [vmem:[#allocation9 + $0x38] sm:$0xff]  ;;  %v390_v30 = vld [vmem:[#allocation9 + $0x48] sm:$0xff]  ;;  %v483_v32 = vld [vmem:[%s1113_s4] ss:$0 sm:$0xff] }
  0x6d   :  { %709 = vmatprep.subr.bf16.mxu0 %v929_v0  ;;  %v776_v28 = vpack.c.bf16 %v388_v27, %v387_v26  ;;  %v779_v31 = vpack.c.bf16 %v390_v30, %v389_v29  ;;  %v392_v38 = vld [vmem:[#allocation9 + $0x58] sm:$0xff]  ;;  %v395_v43 = vld [vmem:[#allocation9 + $0x70] sm:$0xff] }
  0x6e   :  { %732 = vmatpush3.bf16.msra.mxu1 %v731_v36  ;;  %v484_v46 = vld [vmem:[%s1115_s6] ss:$0 sm:$0xff] }
  0x6f   :  { %733 = vmatprep.subr.bf16.mxu1 %v929_v0  ;;  %v485_v51 = vld [vmem:[%s1117_s8] ss:$0 sm:$0xff] }
  0x70   :  { %711 = vmatpush3.bf16.msra.mxu0 %v710_v33 }
  0x71   :  { %712 = vmatprep.subr.bf16.mxu0 %v929_v0 }
  0x72   :  { %735 = vmatpush3.bf16.msra.mxu1 %v734_v44  ;;  %v396_v44 = vld [vmem:[#allocation9 + $0x78] sm:$0xff] }
  0x73   :  { %736 = vmatprep.subr.bf16.mxu1 %v929_v0  ;;  %v788_v45 = vpack.c.bf16 %v396_v44, %v395_v43 }
  0x74   :  { %714 = vmatpush3.bf16.msra.mxu0 %v713_v37  ;;  %v391_v37 = vld [vmem:[#allocation9 + $0x50] sm:$0xff] }
  0x75   :  { %715 = vmatprep.subr.bf16.mxu0 %v929_v0  ;;  %v782_v39 = vpack.c.bf16 %v392_v38, %v391_v37 }
  0x76   :  { %738 = vmatpush3.bf16.msra.mxu1 %v737_v47 }
  0x77   :  { %739 = vmatprep.subr.bf16.mxu1 %v929_v0 }
  0x78   :  { %717 = vmatpush3.bf16.msra.mxu0 %v716_v40  ;;  %v393_v40 = vld [vmem:[#allocation9 + $0x60] sm:$0xff] }
  0x79   :  { %742 = vmatprep.subr.bf16.mxu0 %v929_v0 }
  0x7a   :  { %741 = vmatpush3.bf16.msra.mxu1 %v740_v50 }
  0x7b   :  { %587 = vmatmul.mubr.f32.vlgmr.msra.gmra.mrb[0].mxu0 %v98_v41  ;;  %766 = vmatprep.subr.bf16.mxu1 %v929_v0  ;;  %v394_v41 = vld [vmem:[#allocation9 + $0x68] sm:$0xff] }
  0x7c   :  { %656 = vmatprep.mubr.msk.f32.mxu0 %vm930_vm0, %v931_v1  ;;  %744 = vmatpush3.bf16.msra.mxu0 %v743_v54  ;;  %v785_v42 = vpack.c.bf16 %v394_v41, %v393_v40 }
  0x7d   :  { %745 = vmatprep.subr.bf16.mxu0 %v929_v0 }
  0x80   :  { %747 = vmatpush3.bf16.msra.mxu0 %v746_v56 }
  0x81   :  { %748 = vmatprep.subr.bf16.mxu0 %v929_v0 }
  0x84   :  { %750 = vmatpush3.bf16.msra.mxu0 %v749_v59 }
  0x85   :  { %751 = vmatprep.subr.bf16.mxu0 %v929_v0 }
  0x88   :  { %753 = vmatpush3.bf16.msra.mxu0 %v752_v62 }
  0x89   :  { %754 = vmatprep.subr.bf16.mxu0 %v929_v0 }
  0x8c   :  { %756 = vmatpush3.bf16.msra.mxu0 %v755_v3 }
  0x8d   :  { %757 = vmatprep.subr.bf16.mxu0 %v929_v0 }
  0x90   :  { %759 = vmatpush3.bf16.msra.mxu0 %v758_v11 }
  0x91   :  { %760 = vmatprep.subr.bf16.mxu0 %v929_v0 }
  0x94   :  { %762 = vmatpush3.bf16.msra.mxu0 %v761_v14 }
  0x95   :  { %763 = vmatprep.subr.bf16.mxu0 %v929_v0 }
  0x98   :  { %765 = vmatpush3.bf16.msra.mxu0 %v764_v17 }
 0x14e   :  { %v188_v5 = vpop.f32.mrb[0].mxu0 }
 0x14f   :  { %v189_v6 = vadd.f32 %v482_v4, %v188_v5  ;;  %v588_v7 = vpop.f32.mrb[1].mxu0 }
 0x151   :  { %800 = vtanh.f32 %v189_v6 }
 0x15b   :  { %v801_v8 = vpop.eup %800 }
 0x15c   :  { %622 = vmatmul.mubr.f32.vlgmr.msra.gmra.mrb[0].mxu1 %v801_v8 }
 0x15d   :  { %691 = vmatprep.mubr.msk.f32.mxu1 %vm930_vm0, %v931_v1  ;;  %v767_v1 = vpack.c.bf16 %v382_v19, %v381_v18 }
 0x15f   :  { %768 = vmatpush3.bf16.msra.mxu1 %v767_v1 }
 0x160   :  { %769 = vmatprep.subr.bf16.mxu1 %v929_v0 }
 0x163   :  { %771 = vmatpush3.bf16.msra.mxu1 %v770_v22 }
 0x164   :  { %772 = vmatprep.subr.bf16.mxu1 %v929_v0 }
 0x167   :  { %774 = vmatpush3.bf16.msra.mxu1 %v773_v25 }
 0x168   :  { %775 = vmatprep.subr.bf16.mxu1 %v929_v0 }
 0x16b   :  { %777 = vmatpush3.bf16.msra.mxu1 %v776_v28 }
 0x16c   :  { %778 = vmatprep.subr.bf16.mxu1 %v929_v0 }
 0x16f   :  { %780 = vmatpush3.bf16.msra.mxu1 %v779_v31 }
 0x170   :  { %781 = vmatprep.subr.bf16.mxu1 %v929_v0 }
 0x173   :  { %783 = vmatpush3.bf16.msra.mxu1 %v782_v39 }
 0x174   :  { %784 = vmatprep.subr.bf16.mxu1 %v929_v0 }
 0x177   :  { %786 = vmatpush3.bf16.msra.mxu1 %v785_v42 }
 0x178   :  { %787 = vmatprep.subr.bf16.mxu1 %v929_v0 }
 0x17b   :  { %789 = vmatpush3.bf16.msra.mxu1 %v788_v45 }
 0x22f   :  { %v282_v33 = vpop.f32.mrb[0].mxu1 }
 0x230   :  { %v283_v34 = vadd.f32 %v483_v32, %v282_v33  ;;  %v623_v35 = vpop.f32.mrb[1].mxu1 }
 0x232   :  { %802 = vtanh.f32 %v283_v34 }
 0x23c   :  { %v803_v36 = vpop.eup %802 }
 0x23d   :  { %657 = vmatmul.mubr.f32.vlgmr.msra.gmra.mrb[2].mxu0 %v803_v36 }
 0x310   :  { %v376_v47 = vpop.f32.mrb[2].mxu0 }
 0x311   :  { %v377_v48 = vadd.f32 %v484_v46, %v376_v47  ;;  %v658_v49 = vpop.f32.mrb[3].mxu0 }
 0x313   :  { %804 = vtanh.f32 %v377_v48 }
 0x31d   :  { %v805_v50 = vpop.eup %804 }
 0x31e   :  { %692 = vmatmul.mubr.f32.vlgmr.msra.gmra.mrb[2].mxu1 %v805_v50 }
 0x3f1   :  { %v470_v52 = vpop.f32.mrb[2].mxu1 }
 0x3f2   :  { %v471_v53 = vadd.f32 %v485_v51, %v470_v52  ;;  %v693_v54 = vpop.f32.mrb[3].mxu1 }
 0x3f4   :  { %474 = vst [vmem:[%s1118_s9] sm:$0xff] %v471_v53 }
 0x3f5   :  { %479 = vsyncpa [#allocation3], 1 }
 0x3f6   :  { %480 = vsyncpa [#allocation5], 1 }
 0x3f7   :  { %481 = vsyncpa [#allocation8], 1 }

// kernel: tpu_custom_call.1
= control target key start
LH: loop header
LB: loop body
LE: loop exit
PB: predicated region body
PF: predicated region fallthrough
CT: control target
= control target key end

     0   :  { %14 = vsyncpa [#allocation3], 0  ;;  %s1109_s0 = inlined_call_operand.hbm [shape: f32[8,128], index: 0, kind: input, shape index: {}]   ;;  %s1110_s1 = inlined_call_operand.hbm [shape: f32[128,128], index: 1, kind: input, shape index: {}]   ;;  %s1111_s2 = inlined_call_operand.vmem [shape: f32[1,128], index: 2, kind: input, shape index: {}]   ;;  %s1112_s3 = inlined_call_operand.hbm [shape: f32[128,128], index: 3, kind: input, shape index: {}]   ;;  %s1113_s4 = inlined_call_operand.vmem [shape: f32[1,128], index: 4, kind: input, shape index: {}]   ;;  %s1114_s5 = inlined_call_operand.hbm [shape: f32[128,128], index: 5, kind: input, shape index: {}]   ;;  %s1115_s6 = inlined_call_operand.vmem [shape: f32[1,128], index: 6, kind: input, shape index: {}]   ;;  %s1116_s7 = inlined_call_operand.hbm [shape: f32[128,128], index: 7, kind: input, shape index: {}]   ;;  %s1117_s8 = inlined_call_operand.vmem [shape: f32[1,128], index: 8, kind: input, shape index: {}]   ;;  %s1118_s9 = inlined_call_operand.vmem [shape: f32[8,3], index: 9, kind: output, shape index: {}]  }
   0x1   :  { %15 = vsyncpa [#allocation5], 0 }
   0x2   :  { %16 = vsyncpa [#allocation8], 0  ;;  %s922_s30 = smov [#allocation4]   ;;  %s806_s13 = scalar_lea.hbm %s1110_s1, 2048 }
   0x3   :  { %s32_s10 = sshll.u32 %s922_s30, 4  ;;  %p807_p0 = scmp.ne.s32.totalorder %s1110_s1, %s806_s13  ;;  %s33_s10 = int_to_ptr.vmem [resolvable:$true] %s32_s10 }
   0x4   :  { %p810_p1 = scmp.lt.u32.totalorder %s806_s13, %s1110_s1 }
   0x6   :  { %p812_p2 = pnand %p810_p1, %p807_p0 }
   0x8   :  { %815 = shalt.err (!%p812_p2)
}
   0x9   :  { %s816_s18 = scalar_lea.vmem %s33_s10, 2048  ;;  %p821_p4 = scmp.lt.s32.totalorder %s33_s10, %s33_s10 }
   0xa   :  { %p817_p3 = scmp.ne.s32.totalorder %s33_s10, %s816_s18  ;;  %p822_p5 = scmp.lt.s32.totalorder %s816_s18, %s816_s18 }
   0xc   :  { %p823_p6 = por %p822_p5, %p821_p4 }
   0xe   :  { %p824_p7 = pnand %p823_p6, %p817_p3 }
  0x10   :  { %827 = shalt.err (!%p824_p7)
}
  0x11   :  { %s923_s19 = smov 128   ;;  %s924_s20 = smov 8  }
  0x12   :  { %38 = dma.hbm_to_vmem [thread:$0]  %s1110_s1, 2048, %s33_s10, [#allocation5], %s923_s19, %s923_s19, %s924_s20  }
  0x13   :  { %s925_s23 = smov [#allocation7]   ;;  %s926_s25 = smov [#allocation2]  }
  0x14   :  { %s60_s24 = sshll.u32 %s925_s23, 4  ;;  %s23_s26 = sshll.u32 %s926_s25, 4  ;;  %s61_s24 = int_to_ptr.vmem [resolvable:$true] %s60_s24  ;;  %s24_s26 = int_to_ptr.vmem [resolvable:$true] %s23_s26 }
  0x15   :  { %s828_s29 = scalar_lea.hbm %s1114_s5, 2048 }
  0x16   :  { %p829_p8 = scmp.ne.s32.totalorder %s1114_s5, %s828_s29  ;;  %p832_p9 = scmp.lt.u32.totalorder %s828_s29, %s1114_s5 }
  0x18   :  { %p834_p10 = pnand %p832_p9, %p829_p8 }
  0x1a   :  { %837 = shalt.err (!%p834_p10)
}
  0x1b   :  { %s838_s1 = scalar_lea.vmem %s61_s24, 2048  ;;  %p843_p12 = scmp.lt.s32.totalorder %s61_s24, %s61_s24 }
  0x1c   :  { %p839_p11 = scmp.ne.s32.totalorder %s61_s24, %s838_s1  ;;  %p844_p13 = scmp.lt.s32.totalorder %s838_s1, %s838_s1 }
  0x1e   :  { %p845_p0 = por %p844_p13, %p843_p12 }
  0x20   :  { %p846_p1 = pnand %p845_p0, %p839_p11 }
  0x22   :  { %849 = shalt.err (!%p846_p1)
}
  0x23   :  { %66 = dma.hbm_to_vmem [thread:$0]  %s1114_s5, 2048, %s61_s24, [#allocation8], %s923_s19, %s923_s19, %s924_s20  }
  0x24   :  { %s850_s17 = scalar_lea.hbm %s1109_s0, 128 }
  0x25   :  { %p851_p2 = scmp.ne.s32.totalorder %s1109_s0, %s850_s17  ;;  %p854_p3 = scmp.lt.u32.totalorder %s850_s17, %s1109_s0 }
  0x27   :  { %p856_p4 = pnand %p854_p3, %p851_p2 }
  0x29   :  { %859 = shalt.err (!%p856_p4)
}
  0x2a   :  { %s860_s25 = scalar_lea.vmem %s24_s26, 128  ;;  %p865_p6 = scmp.lt.s32.totalorder %s24_s26, %s24_s26 }
  0x2b   :  { %p861_p5 = scmp.ne.s32.totalorder %s24_s26, %s860_s25  ;;  %p866_p7 = scmp.lt.s32.totalorder %s860_s25, %s860_s25 }
  0x2d   :  { %p867_p8 = por %p866_p7, %p865_p6 }
  0x2f   :  { %p868_p9 = pnand %p867_p8, %p861_p5 }
  0x31   :  { %871 = shalt.err (!%p868_p9)
}
  0x32   :  { %26 = dma.hbm_to_vmem [thread:$0]  %s1109_s0, 128, %s24_s26, [#allocation3]  }
  0x33   :  { %s927_s27 = smov [#allocation6]   ;;  %s928_s29 = smov [#allocation9]  }
  0x34   :  { %s46_s28 = sshll.u32 %s927_s27, 4  ;;  %s74_s30 = sshll.u32 %s928_s29, 4  ;;  %s47_s28 = int_to_ptr.vmem [resolvable:$true] %s46_s28  ;;  %s75_s30 = int_to_ptr.vmem [resolvable:$true] %s74_s30 }
  0x35   :  { %s872_s13 = scalar_lea.hbm %s1112_s3, 2048 }
  0x36   :  { %p873_p10 = scmp.ne.s32.totalorder %s1112_s3, %s872_s13  ;;  %p876_p11 = scmp.lt.u32.totalorder %s872_s13, %s1112_s3 }
  0x38   :  { %p878_p12 = pnand %p876_p11, %p873_p10 }
  0x3a   :  { %881 = shalt.err (!%p878_p12)
}
  0x3b   :  { %s882_s0 = scalar_lea.vmem %s47_s28, 2048  ;;  %p887_p0 = scmp.lt.s32.totalorder %s47_s28, %s47_s28 }
  0x3c   :  { %p883_p13 = scmp.ne.s32.totalorder %s47_s28, %s882_s0  ;;  %p888_p1 = scmp.lt.s32.totalorder %s882_s0, %s882_s0 }
  0x3e   :  { %p889_p2 = por %p888_p1, %p887_p0 }
  0x40   :  { %p890_p3 = pnand %p889_p2, %p883_p13 }
  0x42   :  { %893 = shalt.err (!%p890_p3)
}
  0x43   :  { %52 = dma.hbm_to_vmem [thread:$0]  %s1112_s3, 2048, %s47_s28, [#allocation5], %s923_s19, %s923_s19, %s924_s20  }
  0x44   :  { %s894_s21 = scalar_lea.hbm %s1116_s7, 2048 }
  0x45   :  { %p895_p4 = scmp.ne.s32.totalorder %s1116_s7, %s894_s21  ;;  %p898_p5 = scmp.lt.u32.totalorder %s894_s21, %s1116_s7 }
  0x47   :  { %p900_p6 = pnand %p898_p5, %p895_p4 }
  0x49   :  { %903 = shalt.err (!%p900_p6)
}
  0x4a   :  { %s904_s24 = scalar_lea.vmem %s75_s30, 2048  ;;  %p909_p8 = scmp.lt.s32.totalorder %s75_s30, %s75_s30 }
  0x4b   :  { %p905_p7 = scmp.ne.s32.totalorder %s75_s30, %s904_s24  ;;  %p910_p9 = scmp.lt.s32.totalorder %s904_s24, %s904_s24 }
  0x4d   :  { %p911_p10 = por %p910_p9, %p909_p8 }
  0x4f   :  { %p912_p11 = pnand %p911_p10, %p905_p7 }
  0x51   :  { %915 = shalt.err (!%p912_p11)
}
  0x52   :  { %80 = dma.hbm_to_vmem [thread:$0]  %s1116_s7, 2048, %s75_s30, [#allocation8], %s923_s19, %s923_s19, %s924_s20  }
  0x53   :  { %916 = dma.done.wait [#allocation3], 128  }
  0x54   :  { %917 = vsyncadd [#allocation3], 4294967168 }
  0x55   :  { %918 = dma.done.wait [#allocation5], 4096  }
  0x56   :  { %919 = vsyncadd [#allocation5], 4294963200 }
  0x57   :  { %920 = dma.done.wait [#allocation8], 4096  }
  0x58   :  { %921 = vsyncadd [#allocation8], 4294963200  ;;  %v929_v0 = vmov 0.0|0.0   ;;  %vm930_vm0 = vmmov 0   ;;  %v931_v1 = vmov 0.0   ;;  %v99_v2 = vld [vmem:[#allocation4] sm:$0xff] }
  0x59   :  { %694 = vmatprep.subr.bf16.mxu0 %v929_v0  ;;  %586 = vmatprep.mubr.msk.f32.mxu0 %vm930_vm0, %v931_v1  ;;  %v100_v3 = vld [vmem:[#allocation4 + $0x8] sm:$0xff]  ;;  %v101_v4 = vld [vmem:[#allocation4 + $0x10] sm:$0xff]  ;;  %v102_v6 = vld [vmem:[#allocation4 + $0x18] sm:$0xff] }
  0x5a   :  { %718 = vmatprep.subr.bf16.mxu1 %v929_v0  ;;  %621 = vmatprep.mubr.msk.f32.mxu1 %vm930_vm0, %v931_v1  ;;  %v695_v5 = vpack.c.bf16 %v100_v3, %v99_v2  ;;  %v698_v7 = vpack.c.bf16 %v102_v6, %v101_v4  ;;  %v103_v8 = vld [vmem:[#allocation4 + $0x20] sm:$0xff]  ;;  %v104_v9 = vld [vmem:[#allocation4 + $0x28] sm:$0xff]  ;;  %v195_v12 = vld [vmem:[#allocation6 + $0x10] sm:$0xff] }
  0x5b   :  { %v193_v10 = vld [vmem:[#allocation6] sm:$0xff]  ;;  %v194_v11 = vld [vmem:[#allocation6 + $0x8] sm:$0xff]  ;;  %v196_v13 = vld [vmem:[#allocation6 + $0x18] sm:$0xff]  ;;  %v701_v14 = vpack.c.bf16 %v104_v9, %v103_v8 }
  0x5c   :  { %696 = vmatpush3.bf16.msra.mxu0 %v695_v5  ;;  %v719_v15 = vpack.c.bf16 %v194_v11, %v193_v10  ;;  %v105_v16 = vld [vmem:[#allocation4 + $0x30] sm:$0xff]  ;;  %v106_v17 = vld [vmem:[#allocation4 + $0x38] sm:$0xff]  ;;  %v722_v18 = vpack.c.bf16 %v196_v13, %v195_v12  ;;  %v197_v19 = vld [vmem:[#allocation6 + $0x20] sm:$0xff] }
  0x5d   :  { %697 = vmatprep.subr.bf16.mxu0 %v929_v0  ;;  %v198_v20 = vld [vmem:[#allocation6 + $0x28] sm:$0xff]  ;;  %v704_v21 = vpack.c.bf16 %v106_v17, %v105_v16  ;;  %v107_v22 = vld [vmem:[#allocation4 + $0x40] sm:$0xff]  ;;  %v199_v25 = vld [vmem:[#allocation6 + $0x30] sm:$0xff] }
  0x5e   :  { %720 = vmatpush3.bf16.msra.mxu1 %v719_v15  ;;  %v108_v23 = vld [vmem:[#allocation4 + $0x48] sm:$0xff]  ;;  %v725_v24 = vpack.c.bf16 %v198_v20, %v197_v19  ;;  %v200_v26 = vld [vmem:[#allocation6 + $0x38] sm:$0xff]  ;;  %v109_v28 = vld [vmem:[#allocation4 + $0x50] sm:$0xff] }
  0x5f   :  { %721 = vmatprep.subr.bf16.mxu1 %v929_v0  ;;  %v707_v27 = vpack.c.bf16 %v108_v23, %v107_v22  ;;  %v110_v29 = vld [vmem:[#allocation4 + $0x58] sm:$0xff]  ;;  %v728_v30 = vpack.c.bf16 %v200_v26, %v199_v25  ;;  %v201_v31 = vld [vmem:[#allocation6 + $0x40] sm:$0xff]  ;;  %v202_v32 = vld [vmem:[#allocation6 + $0x48] sm:$0xff] }
  0x60   :  { %699 = vmatpush3.bf16.msra.mxu0 %v698_v7  ;;  %v710_v33 = vpack.c.bf16 %v110_v29, %v109_v28  ;;  %v111_v34 = vld [vmem:[#allocation4 + $0x60] sm:$0xff]  ;;  %v112_v35 = vld [vmem:[#allocation4 + $0x68] sm:$0xff]  ;;  %v731_v36 = vpack.c.bf16 %v202_v32, %v201_v31  ;;  %v113_v38 = vld [vmem:[#allocation4 + $0x70] sm:$0xff] }
  0x61   :  { %700 = vmatprep.subr.bf16.mxu0 %v929_v0  ;;  %v713_v37 = vpack.c.bf16 %v112_v35, %v111_v34  ;;  %v114_v39 = vld [vmem:[#allocation4 + $0x78] sm:$0xff]  ;;  %v203_v42 = vld [vmem:[#allocation6 + $0x50] sm:$0xff]  ;;  %v205_v45 = vld [vmem:[#allocation6 + $0x60] sm:$0xff] }
  0x62   :  { %723 = vmatpush3.bf16.msra.mxu1 %v722_v18  ;;  %v716_v40 = vpack.c.bf16 %v114_v39, %v113_v38  ;;  %v98_v41 = vld [vmem:[#allocation2] sm:$0xff]  ;;  %v206_v46 = vld [vmem:[#allocation6 + $0x68] sm:$0xff]  ;;  %v207_v48 = vld [vmem:[#allocation6 + $0x70] sm:$0xff] }
  0x63   :  { %724 = vmatprep.subr.bf16.mxu1 %v929_v0  ;;  %v204_v43 = vld [vmem:[#allocation6 + $0x58] sm:$0xff]  ;;  %v737_v47 = vpack.c.bf16 %v206_v46, %v205_v45  ;;  %v287_v51 = vld [vmem:[#allocation7] sm:$0xff]  ;;  %v288_v52 = vld [vmem:[#allocation7 + $0x8] sm:$0xff] }
  0x64   :  { %702 = vmatpush3.bf16.msra.mxu0 %v701_v14  ;;  %v734_v44 = vpack.c.bf16 %v204_v43, %v203_v42  ;;  %v208_v49 = vld [vmem:[#allocation6 + $0x78] sm:$0xff]  ;;  %v289_v53 = vld [vmem:[#allocation7 + $0x10] sm:$0xff]  ;;  %v743_v54 = vpack.c.bf16 %v288_v52, %v287_v51  ;;  %v291_v57 = vld [vmem:[#allocation7 + $0x20] sm:$0xff] }
  0x65   :  { %703 = vmatprep.subr.bf16.mxu0 %v929_v0  ;;  %v740_v50 = vpack.c.bf16 %v208_v49, %v207_v48  ;;  %v290_v55 = vld [vmem:[#allocation7 + $0x18] sm:$0xff]  ;;  %v292_v58 = vld [vmem:[#allocation7 + $0x28] sm:$0xff]  ;;  %v293_v60 = vld [vmem:[#allocation7 + $0x30] sm:$0xff] }
  0x66   :  { %726 = vmatpush3.bf16.msra.mxu1 %v725_v24  ;;  %v746_v56 = vpack.c.bf16 %v290_v55, %v289_v53  ;;  %v749_v59 = vpack.c.bf16 %v292_v58, %v291_v57  ;;  %v294_v61 = vld [vmem:[#allocation7 + $0x38] sm:$0xff]  ;;  %v295_v63 = vld [vmem:[#allocation7 + $0x40] sm:$0xff]  ;;  %v296_v2 = vld [vmem:[#allocation7 + $0x48] sm:$0xff] }
  0x67   :  { %727 = vmatprep.subr.bf16.mxu1 %v929_v0  ;;  %v752_v62 = vpack.c.bf16 %v294_v61, %v293_v60  ;;  %v755_v3 = vpack.c.bf16 %v296_v2, %v295_v63  ;;  %v482_v4 = vld [vmem:[%s1111_s2] ss:$0 sm:$0xff]  ;;  %v298_v10 = vld [vmem:[#allocation7 + $0x58] sm:$0xff]  ;;  %v299_v12 = vld [vmem:[#allocation7 + $0x60] sm:$0xff] }
  0x68   :  { %705 = vmatpush3.bf16.msra.mxu0 %v704_v21  ;;  %v297_v9 = vld [vmem:[#allocation7 + $0x50] sm:$0xff]  ;;  %v300_v13 = vld [vmem:[#allocation7 + $0x68] sm:$0xff]  ;;  %v302_v16 = vld [vmem:[#allocation7 + $0x78] sm:$0xff] }
  0x69   :  { %706 = vmatprep.subr.bf16.mxu0 %v929_v0  ;;  %v758_v11 = vpack.c.bf16 %v298_v10, %v297_v9  ;;  %v761_v14 = vpack.c.bf16 %v300_v13, %v299_v12  ;;  %v301_v15 = vld [vmem:[#allocation7 + $0x70] sm:$0xff]  ;;  %v381_v18 = vld [vmem:[#allocation9] sm:$0xff]  ;;  %v382_v19 = vld [vmem:[#allocation9 + $0x8] sm:$0xff] }
  0x6a   :  { %729 = vmatpush3.bf16.msra.mxu1 %v728_v30  ;;  %v764_v17 = vpack.c.bf16 %v302_v16, %v301_v15  ;;  %v383_v20 = vld [vmem:[#allocation9 + $0x10] sm:$0xff]  ;;  %v384_v21 = vld [vmem:[#allocation9 + $0x18] sm:$0xff]  ;;  %v385_v23 = vld [vmem:[#allocation9 + $0x20] sm:$0xff] }
  0x6b   :  { %730 = vmatprep.subr.bf16.mxu1 %v929_v0  ;;  %v770_v22 = vpack.c.bf16 %v384_v21, %v383_v20  ;;  %v386_v24 = vld [vmem:[#allocation9 + $0x28] sm:$0xff]  ;;  %v387_v26 = vld [vmem:[#allocation9 + $0x30] sm:$0xff]  ;;  %v389_v29 = vld [vmem:[#allocation9 + $0x40] sm:$0xff] }
  0x6c   :  { %708 = vmatpush3.bf16.msra.mxu0 %v707_v27  ;;  %v773_v25 = vpack.c.bf16 %v386_v24, %v385_v23  ;;  %v388_v27 = vld [vmem:[#allocation9 + $0x38] sm:$0xff]  ;;  %v390_v30 = vld [vmem:[#allocation9 + $0x48] sm:$0xff]  ;;  %v483_v32 = vld [vmem:[%s1113_s4] ss:$0 sm:$0xff] }
  0x6d   :  { %709 = vmatprep.subr.bf16.mxu0 %v929_v0  ;;  %v776_v28 = vpack.c.bf16 %v388_v27, %v387_v26  ;;  %v779_v31 = vpack.c.bf16 %v390_v30, %v389_v29  ;;  %v392_v38 = vld [vmem:[#allocation9 + $0x58] sm:$0xff]  ;;  %v395_v43 = vld [vmem:[#allocation9 + $0x70] sm:$0xff] }
  0x6e   :  { %732 = vmatpush3.bf16.msra.mxu1 %v731_v36  ;;  %v484_v46 = vld [vmem:[%s1115_s6] ss:$0 sm:$0xff] }
  0x6f   :  { %733 = vmatprep.subr.bf16.mxu1 %v929_v0  ;;  %v485_v51 = vld [vmem:[%s1117_s8] ss:$0 sm:$0xff] }
  0x70   :  { %711 = vmatpush3.bf16.msra.mxu0 %v710_v33 }
  0x71   :  { %712 = vmatprep.subr.bf16.mxu0 %v929_v0 }
  0x72   :  { %735 = vmatpush3.bf16.msra.mxu1 %v734_v44  ;;  %v396_v44 = vld [vmem:[#allocation9 + $0x78] sm:$0xff] }
  0x73   :  { %736 = vmatprep.subr.bf16.mxu1 %v929_v0  ;;  %v788_v45 = vpack.c.bf16 %v396_v44, %v395_v43 }
  0x74   :  { %714 = vmatpush3.bf16.msra.mxu0 %v713_v37  ;;  %v391_v37 = vld [vmem:[#allocation9 + $0x50] sm:$0xff] }
  0x75   :  { %715 = vmatprep.subr.bf16.mxu0 %v929_v0  ;;  %v782_v39 = vpack.c.bf16 %v392_v38, %v391_v37 }
  0x76   :  { %738 = vmatpush3.bf16.msra.mxu1 %v737_v47 }
  0x77   :  { %739 = vmatprep.subr.bf16.mxu1 %v929_v0 }
  0x78   :  { %717 = vmatpush3.bf16.msra.mxu0 %v716_v40  ;;  %v393_v40 = vld [vmem:[#allocation9 + $0x60] sm:$0xff] }
  0x79   :  { %742 = vmatprep.subr.bf16.mxu0 %v929_v0 }
  0x7a   :  { %741 = vmatpush3.bf16.msra.mxu1 %v740_v50 }
  0x7b   :  { %587 = vmatmul.mubr.f32.vlgmr.msra.gmra.mrb[0].mxu0 %v98_v41  ;;  %766 = vmatprep.subr.bf16.mxu1 %v929_v0  ;;  %v394_v41 = vld [vmem:[#allocation9 + $0x68] sm:$0xff] }
  0x7c   :  { %656 = vmatprep.mubr.msk.f32.mxu0 %vm930_vm0, %v931_v1  ;;  %744 = vmatpush3.bf16.msra.mxu0 %v743_v54  ;;  %v785_v42 = vpack.c.bf16 %v394_v41, %v393_v40 }
  0x7d   :  { %745 = vmatprep.subr.bf16.mxu0 %v929_v0 }
  0x80   :  { %747 = vmatpush3.bf16.msra.mxu0 %v746_v56 }
  0x81   :  { %748 = vmatprep.subr.bf16.mxu0 %v929_v0 }
  0x84   :  { %750 = vmatpush3.bf16.msra.mxu0 %v749_v59 }
  0x85   :  { %751 = vmatprep.subr.bf16.mxu0 %v929_v0 }
  0x88   :  { %753 = vmatpush3.bf16.msra.mxu0 %v752_v62 }
  0x89   :  { %754 = vmatprep.subr.bf16.mxu0 %v929_v0 }
  0x8c   :  { %756 = vmatpush3.bf16.msra.mxu0 %v755_v3 }
  0x8d   :  { %757 = vmatprep.subr.bf16.mxu0 %v929_v0 }
  0x90   :  { %759 = vmatpush3.bf16.msra.mxu0 %v758_v11 }
  0x91   :  { %760 = vmatprep.subr.bf16.mxu0 %v929_v0 }
  0x94   :  { %762 = vmatpush3.bf16.msra.mxu0 %v761_v14 }
  0x95   :  { %763 = vmatprep.subr.bf16.mxu0 %v929_v0 }
  0x98   :  { %765 = vmatpush3.bf16.msra.mxu0 %v764_v17 }
 0x14e   :  { %v188_v5 = vpop.f32.mrb[0].mxu0 }
 0x14f   :  { %v189_v6 = vadd.f32 %v482_v4, %v188_v5  ;;  %v588_v7 = vpop.f32.mrb[1].mxu0 }
 0x151   :  { %800 = vtanh.f32 %v189_v6 }
 0x15b   :  { %v801_v8 = vpop.eup %800 }
 0x15c   :  { %622 = vmatmul.mubr.f32.vlgmr.msra.gmra.mrb[0].mxu1 %v801_v8 }
 0x15d   :  { %691 = vmatprep.mubr.msk.f32.mxu1 %vm930_vm0, %v931_v1  ;;  %v767_v1 = vpack.c.bf16 %v382_v19, %v381_v18 }
 0x15f   :  { %768 = vmatpush3.bf16.msra.mxu1 %v767_v1 }
 0x160   :  { %769 = vmatprep.subr.bf16.mxu1 %v929_v0 }
 0x163   :  { %771 = vmatpush3.bf16.msra.mxu1 %v770_v22 }
 0x164   :  { %772 = vmatprep.subr.bf16.mxu1 %v929_v0 }
 0x167   :  { %774 = vmatpush3.bf16.msra.mxu1 %v773_v25 }
 0x168   :  { %775 = vmatprep.subr.bf16.mxu1 %v929_v0 }
 0x16b   :  { %777 = vmatpush3.bf16.msra.mxu1 %v776_v28 }
 0x16c   :  { %778 = vmatprep.subr.bf16.mxu1 %v929_v0 }
 0x16f   :  { %780 = vmatpush3.bf16.msra.mxu1 %v779_v31 }
 0x170   :  { %781 = vmatprep.subr.bf16.mxu1 %v929_v0 }
 0x173   :  { %783 = vmatpush3.bf16.msra.mxu1 %v782_v39 }
 0x174   :  { %784 = vmatprep.subr.bf16.mxu1 %v929_v0 }
 0x177   :  { %786 = vmatpush3.bf16.msra.mxu1 %v785_v42 }
 0x178   :  { %787 = vmatprep.subr.bf16.mxu1 %v929_v0 }
 0x17b   :  { %789 = vmatpush3.bf16.msra.mxu1 %v788_v45 }
 0x22f   :  { %v282_v33 = vpop.f32.mrb[0].mxu1 }
 0x230   :  { %v283_v34 = vadd.f32 %v483_v32, %v282_v33  ;;  %v623_v35 = vpop.f32.mrb[1].mxu1 }
 0x232   :  { %802 = vtanh.f32 %v283_v34 }
 0x23c   :  { %v803_v36 = vpop.eup %802 }
 0x23d   :  { %657 = vmatmul.mubr.f32.vlgmr.msra.gmra.mrb[2].mxu0 %v803_v36 }
 0x310   :  { %v376_v47 = vpop.f32.mrb[2].mxu0 }
 0x311   :  { %v377_v48 = vadd.f32 %v484_v46, %v376_v47  ;;  %v658_v49 = vpop.f32.mrb[3].mxu0 }
 0x313   :  { %804 = vtanh.f32 %v377_v48 }
 0x31d   :  { %v805_v50 = vpop.eup %804 }
 0x31e   :  { %692 = vmatmul.mubr.f32.vlgmr.msra.gmra.mrb[2].mxu1 %v805_v50 }
 0x3f1   :  { %v470_v52 = vpop.f32.mrb[2].mxu1 }
 0x3f2   :  { %v471_v53 = vadd.f32 %v485_v51, %v470_v52  ;;  %v693_v54 = vpop.f32.mrb[3].mxu1 }
 0x3f4   :  { %474 = vst [vmem:[%s1118_s9] sm:$0xff] %v471_v53 }
 0x3f5   :  { %479 = vsyncpa [#allocation3], 1 }
 0x3f6   :  { %480 = vsyncpa [#allocation5], 1 }
 0x3f7   :  { %481 = vsyncpa [#allocation8], 1 }

</bundles_post_ra>
